<compile_context>
chip_gen: v7x
topology: tpu7x:2x2x1
jax: 0.10.0
libtpu: 0.0.40
codegen_flags: <defaults>
</compile_context>

<pallas_src>
import jax
import jax.numpy as jnp
from jax.experimental import pallas as pl
from jax.experimental.pallas import tpu as pltpu


def _cbl_upsample_kernel(x_ref, w_ref, b_ref, r_ref, o_ref):
    """Fused 1x1-conv (BN folded) + LeakyReLU(0.1) + nearest 2x upsample.

    x_ref: (Cin, TH*W)       flattened input row tile (W fastest, NCHW order)
    w_ref: (Cout, Cin)       BN-scale-folded conv weight
    b_ref: (Cout, 1)         folded BN bias (beta - mean * scale), f32
    r_ref: (W, 2W)           constant 0/1 width-repeat matrix, R[w, 2w+s] = 1
    o_ref: (Cout, 4*TH*W)    output tile; lanes [t*4W .. (t+1)*4W) hold the
                             upsampled rows 2*(h0+t) and 2*(h0+t)+1, i.e.
                             [row_even(2W) | row_odd(2W)] (identical copies).
    """
    W = r_ref.shape[0]
    th = x_ref.shape[1] // W

    x = x_ref[...]                                   # (Cin, TH*W)
    w = w_ref[...]                                   # (Cout, Cin)
    b = b_ref[...]                                   # (Cout, 1) f32
    r = r_ref[...]                                   # (W, 2W)

    # 1x1 conv over all TH*W pixels: one MXU matmul, f32 accumulation.
    y = jnp.dot(w, x, preferred_element_type=jnp.float32)   # (Cout, TH*W)
    y = y + b                                                # folded BN bias
    y = jnp.maximum(y, 0.1 * y)                              # LeakyReLU(0.1)
    y = y.astype(o_ref.dtype)

    # Per input row: width repeat via a tiny 0/1 matmul, height repeat by
    # writing the same 2W-wide row into both halves of its 4W output slot.
    for t in range(th):
        row = y[:, t * W:(t + 1) * W]                        # (Cout, W)
        rw = jnp.dot(row, r,
                     preferred_element_type=jnp.float32)     # (Cout, 2W)
        rw = rw.astype(o_ref.dtype)
        z = jnp.concatenate([rw, rw], axis=-1)               # (Cout, 4W)
        o_ref[:, t * 4 * W:(t + 1) * 4 * W] = z


def _pad(v, m):
    return -(-v // m) * m


def _vmem_capacity_bytes():
    """Physical VMEM of the attached TPU, with a conservative fallback."""
    try:
        info = pltpu.get_tpu_info()
        for name in ("vmem_capacity_bytes", "vmem_size_bytes", "vmem_bytes"):
            v = getattr(info, name, None)
            if v:
                return int(v)
    except Exception:
        pass
    return 64 << 20          # v7x-sized fallback (smallest current part)


def _step_vmem_bytes(th, W, cin, cout, itemsize):
    """All double-buffered, (8,128)-padded blocks resident for one grid step."""
    x_blk = 2 * _pad(cin, 8) * _pad(th * W, 128) * itemsize
    w_blk = 2 * _pad(cout, 8) * _pad(cin, 128) * itemsize
    b_blk = 2 * _pad(cout, 8) * 128 * 4
    r_blk = 2 * _pad(W, 8) * _pad(2 * W, 128) * itemsize
    o_blk = 2 * _pad(cout, 8) * _pad(4 * th * W, 128) * itemsize
    return x_blk + w_blk + b_blk + r_blk + o_blk


def _pick_row_tile(H, W, cin, cout, itemsize, budget, max_rows=64):
    """Largest row tile TH whose blocks fit `budget`.

    TH must keep the flattened lane block either 128-aligned (TH*W % 128 == 0)
    or equal to the full spatial extent (TH == H), per the (8,128) BlockSpec
    constraint.  Non-divisor tiles are fine (grid uses cdiv + masked edge).
    """
    for th in range(min(H, max_rows), 0, -1):
        if th != H and (th * W) % 128 != 0:
            continue
        if _step_vmem_bytes(th, W, cin, cout, itemsize) <= budget:
            return th
    aligned = [t for t in range(1, H) if (t * W) % 128 == 0]
    return aligned[0] if aligned else H


def upsample_forward(x_nchw, conv_w, gamma, beta, run_mean, run_var, eps=1e-5):
    """Full Upsample.forward: CBL(1x1) + nearest 2x upsample. NCHW in/out.

    BatchNorm uses running statistics (inference semantics).
    """
    N, Cin, H, W = x_nchw.shape
    Cout = conv_w.shape[0]
    dtype = x_nchw.dtype
    itemsize = dtype.itemsize

    # Fold BatchNorm (inference) into the conv weight and a per-channel bias.
    scale = gamma / jnp.sqrt(run_var + eps)                     # (Cout,)
    bias = beta - run_mean * scale                              # (Cout,)
    w_k = (conv_w[:, :, 0, 0] * scale[:, None]).astype(dtype)   # (Cout, Cin)
    b_k = bias.reshape(Cout, 1).astype(jnp.float32)             # (Cout, 1)

    # Constant 0/1 width-repeat matrix: (row @ R)[c, u] = row[c, u // 2].
    rep = (jnp.arange(2 * W)[None, :] // 2
           == jnp.arange(W)[:, None]).astype(dtype)             # (W, 2W)

    # Free reshapes of contiguous NCHW data (metadata only).
    x_flat = x_nchw.reshape(N, Cin, H * W)

    # Per-generation VMEM budgeting (<= ~45 MiB on v7x, larger on v5e/v6e).
    cap = _vmem_capacity_bytes()
    vmem_limit = min(int(0.70 * cap), 100 << 20)
    tile_budget = int(0.85 * vmem_limit)
    th = _pick_row_tile(H, W, Cin, Cout, itemsize, tile_budget)
    grid = (N, pl.cdiv(H, th))

    flops = 2 * N * H * W * Cout * (Cin + 2 * W)
    bytes_accessed = ((N * Cin * H * W + N * Cout * 4 * H * W) * itemsize
                      + (w_k.size + rep.size) * itemsize + b_k.size * 4)

    out_flat = pl.pallas_call(
        _cbl_upsample_kernel,
        out_shape=jax.ShapeDtypeStruct((N, Cout, 4 * H * W), dtype),
        grid_spec=pltpu.PrefetchScalarGridSpec(
            num_scalar_prefetch=0,
            grid=grid,
            in_specs=[
                pl.BlockSpec((None, Cin, th * W), lambda n, h: (n, 0, h)),
                pl.BlockSpec((Cout, Cin), lambda n, h: (0, 0)),
                pl.BlockSpec((Cout, 1), lambda n, h: (0, 0)),
                pl.BlockSpec((W, 2 * W), lambda n, h: (0, 0)),
            ],
            out_specs=pl.BlockSpec((None, Cout, 4 * th * W),
                                   lambda n, h: (n, 0, h)),
        ),
        compiler_params=pltpu.CompilerParams(
            dimension_semantics=("parallel", "parallel"),
            vmem_limit_bytes=int(vmem_limit)),
        cost_estimate=pl.CostEstimate(
            flops=int(flops), transcendentals=0,
            bytes_accessed=int(bytes_accessed)),
    )(x_flat, w_k, b_k, rep)

    # Free reshape: (N, Cout, H, [even 2W | odd 2W]) -> (N, Cout, 2H, 2W).
    return out_flat.reshape(N, Cout, 2 * H, 2 * W)


def _reference(x_nchw, conv_w, gamma, beta, run_mean, run_var, eps=1e-5):
    """Pure-JAX reference (inference-mode BN) for correctness checking."""
    w_mat = conv_w[:, :, 0, 0]                                  # (Cout, Cin)
    conv = jnp.einsum('nchw,oc->nohw', x_nchw, w_mat, precision='highest')
    scale = (gamma / jnp.sqrt(run_var + eps)).reshape(1, -1, 1, 1)
    bias = (beta - run_mean * gamma / jnp.sqrt(run_var + eps)).reshape(1, -1, 1, 1)
    y = conv * scale + bias
    y = jnp.where(y > 0, y, 0.1 * y)
    y = jnp.repeat(jnp.repeat(y, 2, axis=2), 2, axis=3)
    return y


if __name__ == "__main__":
    key = jax.random.PRNGKey(0)
    N, Cin, Cout, H, W = 2, 4, 8, 16, 16

    k_x, k_w, k_g, k_b, k_m, k_v = jax.random.split(key, 6)
    x = jax.random.normal(k_x, (N, Cin, H, W), dtype=jnp.float32)

    # Deterministic synthetic parameters (shapes from the module's __init__).
    conv_w = jax.random.normal(k_w, (Cout, Cin, 1, 1), dtype=jnp.float32) * 0.1
    gamma = 1.0 + 0.1 * jax.random.normal(k_g, (Cout,), dtype=jnp.float32)
    beta = 0.1 * jax.random.normal(k_b, (Cout,), dtype=jnp.float32)
    run_mean = 0.05 * jax.random.normal(k_m, (Cout,), dtype=jnp.float32)
    run_var = jnp.abs(jax.random.normal(k_v, (Cout,), dtype=jnp.float32)) + 0.5

    out = upsample_forward(x, conv_w, gamma, beta, run_mean, run_var)
    out = jax.block_until_ready(out)

    ref = _reference(x, conv_w, gamma, beta, run_mean, run_var)
    assert out.shape == (N, Cout, 2 * H, 2 * W), out.shape
    # Tolerance accommodates MXU bf16-pass rounding of the f32 matmul; any
    # semantic bug (BN fold / bias / slope / upsample mapping) is >> 5e-3.
    assert jnp.allclose(out, ref, atol=5e-3, rtol=5e-3), \
        float(jnp.max(jnp.abs(out - ref)))

    print("KERNEL_OK")
</pallas_src>

<mosaic_0001>
module attributes {stable_mosaic.version = 11 : i64} {
  func.func @_cbl_upsample_kernel(%arg0: i32, %arg1: i32, %arg2: memref<1x4x256xf32, #tpu.memory_space<vmem>>, %arg3: memref<8x4xf32, #tpu.memory_space<vmem>>, %arg4: memref<8x1xf32, #tpu.memory_space<vmem>>, %arg5: memref<16x32xf32, #tpu.memory_space<vmem>>, %arg6: memref<1x8x1024xf32, #tpu.memory_space<vmem>>) attributes {dimension_semantics = [#tpu.dimension_semantics<parallel>, #tpu.dimension_semantics<parallel>], iteration_bounds = array<i64: 2, 1>, scalar_prefetch = 0 : i64, scratch_operands = 0 : i64, tpu.core_type = #tpu.core_type<tc>, window_params = [{transform_indices = @transform_0, window_bounds = array<i64: 1, 4, 256>}, {pipeline_mode = #tpu.pipeline_mode<synchronous>, transform_indices = @transform_1, window_bounds = array<i64: 8, 4>}, {pipeline_mode = #tpu.pipeline_mode<synchronous>, transform_indices = @transform_2, window_bounds = array<i64: 8, 1>}, {pipeline_mode = #tpu.pipeline_mode<synchronous>, transform_indices = @transform_3, window_bounds = array<i64: 16, 32>}, {transform_indices = @transform_4, window_bounds = array<i64: 1, 8, 1024>}]} {
    %c0 = arith.constant 0 : index
    %c0_0 = arith.constant 0 : index
    %c0_1 = arith.constant 0 : index
    %0 = vector.load %arg2[%c0, %c0_0, %c0_1] : memref<1x4x256xf32, #tpu.memory_space<vmem>>, vector<1x4x256xf32>
    %1 = vector.shape_cast %0 : vector<1x4x256xf32> to vector<4x256xf32>
    %c0_2 = arith.constant 0 : index
    %c0_3 = arith.constant 0 : index
    %2 = vector.load %arg3[%c0_2, %c0_3] : memref<8x4xf32, #tpu.memory_space<vmem>>, vector<8x4xf32>
    %c0_4 = arith.constant 0 : index
    %c0_5 = arith.constant 0 : index
    %3 = vector.load %arg4[%c0_4, %c0_5] : memref<8x1xf32, #tpu.memory_space<vmem>>, vector<8x1xf32>
    %c0_6 = arith.constant 0 : index
    %c0_7 = arith.constant 0 : index
    %4 = vector.load %arg5[%c0_6, %c0_7] : memref<16x32xf32, #tpu.memory_space<vmem>>, vector<16x32xf32>
    %cst = arith.constant dense<0.000000e+00> : vector<8x256xf32>
    %5 = tpu.matmul %2, %1, %cst {dimension_numbers = #tpu.dot_dimension_numbers<[1], [0], [0], [1], [0, 0, 1, 1], [], []>} : vector<8x4xf32>, vector<4x256xf32>, vector<8x256xf32> -> vector<8x256xf32>
    %6 = vector.broadcast %3 : vector<8x1xf32> to vector<8x256xf32>
    %7 = arith.addf %5, %6 : vector<8x256xf32>
    %cst_8 = arith.constant 1.000000e-01 : f32
    %8 = vector.broadcast %cst_8 : f32 to vector<8x256xf32>
    %9 = arith.mulf %8, %7 : vector<8x256xf32>
    %10 = arith.maximumf %7, %9 : vector<8x256xf32>
    %11 = vector.extract_strided_slice %10 {offsets = [0, 0], sizes = [8, 16], strides = [1, 1]} : vector<8x256xf32> to vector<8x16xf32>
    %cst_9 = arith.constant dense<0.000000e+00> : vector<8x32xf32>
    %12 = tpu.matmul %11, %4, %cst_9 {dimension_numbers = #tpu.dot_dimension_numbers<[1], [0], [0], [1], [0, 0, 1, 1], [], []>} : vector<8x16xf32>, vector<16x32xf32>, vector<8x32xf32> -> vector<8x32xf32>
    %13 = tpu.concatenate %12, %12 in 1 : vector<8x32xf32>, vector<8x32xf32> -> vector<8x64xf32>
    %c0_10 = arith.constant 0 : index
    %c0_11 = arith.constant 0 : index
    %c0_12 = arith.constant 0 : index
    %14 = vector.load %arg6[%c0_10, %c0_11, %c0_12] : memref<1x8x1024xf32, #tpu.memory_space<vmem>>, vector<1x8x64xf32>
    %15 = vector.shape_cast %14 : vector<1x8x64xf32> to vector<8x64xf32>
    %16 = vector.shape_cast %13 : vector<8x64xf32> to vector<1x8x64xf32>
    tpu.vector_store %arg6[%c0_10, %c0_11, %c0_12], %16 {strides = array<i32>} : memref<1x8x1024xf32, #tpu.memory_space<vmem>>, vector<1x8x64xf32>,
    %17 = vector.extract_strided_slice %10 {offsets = [0, 16], sizes = [8, 16], strides = [1, 1]} : vector<8x256xf32> to vector<8x16xf32>
    %cst_13 = arith.constant dense<0.000000e+00> : vector<8x32xf32>
    %18 = tpu.matmul %17, %4, %cst_13 {dimension_numbers = #tpu.dot_dimension_numbers<[1], [0], [0], [1], [0, 0, 1, 1], [], []>} : vector<8x16xf32>, vector<16x32xf32>, vector<8x32xf32> -> vector<8x32xf32>
    %19 = tpu.concatenate %18, %18 in 1 : vector<8x32xf32>, vector<8x32xf32> -> vector<8x64xf32>
    %c0_14 = arith.constant 0 : index
    %c0_15 = arith.constant 0 : index
    %c64 = arith.constant 64 : index
    %20 = vector.load %arg6[%c0_14, %c0_15, %c64] : memref<1x8x1024xf32, #tpu.memory_space<vmem>>, vector<1x8x64xf32>
    %21 = vector.shape_cast %20 : vector<1x8x64xf32> to vector<8x64xf32>
    %22 = vector.shape_cast %19 : vector<8x64xf32> to vector<1x8x64xf32>
    tpu.vector_store %arg6[%c0_14, %c0_15, %c64], %22 {strides = array<i32>} : memref<1x8x1024xf32, #tpu.memory_space<vmem>>, vector<1x8x64xf32>,
    %23 = vector.extract_strided_slice %10 {offsets = [0, 32], sizes = [8, 16], strides = [1, 1]} : vector<8x256xf32> to vector<8x16xf32>
    %cst_16 = arith.constant dense<0.000000e+00> : vector<8x32xf32>
    %24 = tpu.matmul %23, %4, %cst_16 {dimension_numbers = #tpu.dot_dimension_numbers<[1], [0], [0], [1], [0, 0, 1, 1], [], []>} : vector<8x16xf32>, vector<16x32xf32>, vector<8x32xf32> -> vector<8x32xf32>
    %25 = tpu.concatenate %24, %24 in 1 : vector<8x32xf32>, vector<8x32xf32> -> vector<8x64xf32>
    %c0_17 = arith.constant 0 : index
    %c0_18 = arith.constant 0 : index
    %c128 = arith.constant 128 : index
    %26 = vector.load %arg6[%c0_17, %c0_18, %c128] : memref<1x8x1024xf32, #tpu.memory_space<vmem>>, vector<1x8x64xf32>
    %27 = vector.shape_cast %26 : vector<1x8x64xf32> to vector<8x64xf32>
    %28 = vector.shape_cast %25 : vector<8x64xf32> to vector<1x8x64xf32>
    tpu.vector_store %arg6[%c0_17, %c0_18, %c128], %28 {strides = array<i32>} : memref<1x8x1024xf32, #tpu.memory_space<vmem>>, vector<1x8x64xf32>,
    %29 = vector.extract_strided_slice %10 {offsets = [0, 48], sizes = [8, 16], strides = [1, 1]} : vector<8x256xf32> to vector<8x16xf32>
    %cst_19 = arith.constant dense<0.000000e+00> : vector<8x32xf32>
    %30 = tpu.matmul %29, %4, %cst_19 {dimension_numbers = #tpu.dot_dimension_numbers<[1], [0], [0], [1], [0, 0, 1, 1], [], []>} : vector<8x16xf32>, vector<16x32xf32>, vector<8x32xf32> -> vector<8x32xf32>
    %31 = tpu.concatenate %30, %30 in 1 : vector<8x32xf32>, vector<8x32xf32> -> vector<8x64xf32>
    %c0_20 = arith.constant 0 : index
    %c0_21 = arith.constant 0 : index
    %c192 = arith.constant 192 : index
    %32 = vector.load %arg6[%c0_20, %c0_21, %c192] : memref<1x8x1024xf32, #tpu.memory_space<vmem>>, vector<1x8x64xf32>
    %33 = vector.shape_cast %32 : vector<1x8x64xf32> to vector<8x64xf32>
    %34 = vector.shape_cast %31 : vector<8x64xf32> to vector<1x8x64xf32>
    tpu.vector_store %arg6[%c0_20, %c0_21, %c192], %34 {strides = array<i32>} : memref<1x8x1024xf32, #tpu.memory_space<vmem>>, vector<1x8x64xf32>,
    %35 = vector.extract_strided_slice %10 {offsets = [0, 64], sizes = [8, 16], strides = [1, 1]} : vector<8x256xf32> to vector<8x16xf32>
    %cst_22 = arith.constant dense<0.000000e+00> : vector<8x32xf32>
    %36 = tpu.matmul %35, %4, %cst_22 {dimension_numbers = #tpu.dot_dimension_numbers<[1], [0], [0], [1], [0, 0, 1, 1], [], []>} : vector<8x16xf32>, vector<16x32xf32>, vector<8x32xf32> -> vector<8x32xf32>
    %37 = tpu.concatenate %36, %36 in 1 : vector<8x32xf32>, vector<8x32xf32> -> vector<8x64xf32>
    %c0_23 = arith.constant 0 : index
    %c0_24 = arith.constant 0 : index
    %c256 = arith.constant 256 : index
    %38 = vector.load %arg6[%c0_23, %c0_24, %c256] : memref<1x8x1024xf32, #tpu.memory_space<vmem>>, vector<1x8x64xf32>
    %39 = vector.shape_cast %38 : vector<1x8x64xf32> to vector<8x64xf32>
    %40 = vector.shape_cast %37 : vector<8x64xf32> to vector<1x8x64xf32>
    tpu.vector_store %arg6[%c0_23, %c0_24, %c256], %40 {strides = array<i32>} : memref<1x8x1024xf32, #tpu.memory_space<vmem>>, vector<1x8x64xf32>,
    %41 = vector.extract_strided_slice %10 {offsets = [0, 80], sizes = [8, 16], strides = [1, 1]} : vector<8x256xf32> to vector<8x16xf32>
    %cst_25 = arith.constant dense<0.000000e+00> : vector<8x32xf32>
    %42 = tpu.matmul %41, %4, %cst_25 {dimension_numbers = #tpu.dot_dimension_numbers<[1], [0], [0], [1], [0, 0, 1, 1], [], []>} : vector<8x16xf32>, vector<16x32xf32>, vector<8x32xf32> -> vector<8x32xf32>
    %43 = tpu.concatenate %42, %42 in 1 : vector<8x32xf32>, vector<8x32xf32> -> vector<8x64xf32>
    %c0_26 = arith.constant 0 : index
    %c0_27 = arith.constant 0 : index
    %c320 = arith.constant 320 : index
    %44 = vector.load %arg6[%c0_26, %c0_27, %c320] : memref<1x8x1024xf32, #tpu.memory_space<vmem>>, vector<1x8x64xf32>
    %45 = vector.shape_cast %44 : vector<1x8x64xf32> to vector<8x64xf32>
    %46 = vector.shape_cast %43 : vector<8x64xf32> to vector<1x8x64xf32>
    tpu.vector_store %arg6[%c0_26, %c0_27, %c320], %46 {strides = array<i32>} : memref<1x8x1024xf32, #tpu.memory_space<vmem>>, vector<1x8x64xf32>,
    %47 = vector.extract_strided_slice %10 {offsets = [0, 96], sizes = [8, 16], strides = [1, 1]} : vector<8x256xf32> to vector<8x16xf32>
    %cst_28 = arith.constant dense<0.000000e+00> : vector<8x32xf32>
    %48 = tpu.matmul %47, %4, %cst_28 {dimension_numbers = #tpu.dot_dimension_numbers<[1], [0], [0], [1], [0, 0, 1, 1], [], []>} : vector<8x16xf32>, vector<16x32xf32>, vector<8x32xf32> -> vector<8x32xf32>
    %49 = tpu.concatenate %48, %48 in 1 : vector<8x32xf32>, vector<8x32xf32> -> vector<8x64xf32>
    %c0_29 = arith.constant 0 : index
    %c0_30 = arith.constant 0 : index
    %c384 = arith.constant 384 : index
    %50 = vector.load %arg6[%c0_29, %c0_30, %c384] : memref<1x8x1024xf32, #tpu.memory_space<vmem>>, vector<1x8x64xf32>
    %51 = vector.shape_cast %50 : vector<1x8x64xf32> to vector<8x64xf32>
    %52 = vector.shape_cast %49 : vector<8x64xf32> to vector<1x8x64xf32>
    tpu.vector_store %arg6[%c0_29, %c0_30, %c384], %52 {strides = array<i32>} : memref<1x8x1024xf32, #tpu.memory_space<vmem>>, vector<1x8x64xf32>,
    %53 = vector.extract_strided_slice %10 {offsets = [0, 112], sizes = [8, 16], strides = [1, 1]} : vector<8x256xf32> to vector<8x16xf32>
    %cst_31 = arith.constant dense<0.000000e+00> : vector<8x32xf32>
    %54 = tpu.matmul %53, %4, %cst_31 {dimension_numbers = #tpu.dot_dimension_numbers<[1], [0], [0], [1], [0, 0, 1, 1], [], []>} : vector<8x16xf32>, vector<16x32xf32>, vector<8x32xf32> -> vector<8x32xf32>
    %55 = tpu.concatenate %54, %54 in 1 : vector<8x32xf32>, vector<8x32xf32> -> vector<8x64xf32>
    %c0_32 = arith.constant 0 : index
    %c0_33 = arith.constant 0 : index
    %c448 = arith.constant 448 : index
    %56 = vector.load %arg6[%c0_32, %c0_33, %c448] : memref<1x8x1024xf32, #tpu.memory_space<vmem>>, vector<1x8x64xf32>
    %57 = vector.shape_cast %56 : vector<1x8x64xf32> to vector<8x64xf32>
    %58 = vector.shape_cast %55 : vector<8x64xf32> to vector<1x8x64xf32>
    tpu.vector_store %arg6[%c0_32, %c0_33, %c448], %58 {strides = array<i32>} : memref<1x8x1024xf32, #tpu.memory_space<vmem>>, vector<1x8x64xf32>,
    %59 = vector.extract_strided_slice %10 {offsets = [0, 128], sizes = [8, 16], strides = [1, 1]} : vector<8x256xf32> to vector<8x16xf32>
    %cst_34 = arith.constant dense<0.000000e+00> : vector<8x32xf32>
    %60 = tpu.matmul %59, %4, %cst_34 {dimension_numbers = #tpu.dot_dimension_numbers<[1], [0], [0], [1], [0, 0, 1, 1], [], []>} : vector<8x16xf32>, vector<16x32xf32>, vector<8x32xf32> -> vector<8x32xf32>
    %61 = tpu.concatenate %60, %60 in 1 : vector<8x32xf32>, vector<8x32xf32> -> vector<8x64xf32>
    %c0_35 = arith.constant 0 : index
    %c0_36 = arith.constant 0 : index
    %c512 = arith.constant 512 : index
    %62 = vector.load %arg6[%c0_35, %c0_36, %c512] : memref<1x8x1024xf32, #tpu.memory_space<vmem>>, vector<1x8x64xf32>
    %63 = vector.shape_cast %62 : vector<1x8x64xf32> to vector<8x64xf32>
    %64 = vector.shape_cast %61 : vector<8x64xf32> to vector<1x8x64xf32>
    tpu.vector_store %arg6[%c0_35, %c0_36, %c512], %64 {strides = array<i32>} : memref<1x8x1024xf32, #tpu.memory_space<vmem>>, vector<1x8x64xf32>,
    %65 = vector.extract_strided_slice %10 {offsets = [0, 144], sizes = [8, 16], strides = [1, 1]} : vector<8x256xf32> to vector<8x16xf32>
    %cst_37 = arith.constant dense<0.000000e+00> : vector<8x32xf32>
    %66 = tpu.matmul %65, %4, %cst_37 {dimension_numbers = #tpu.dot_dimension_numbers<[1], [0], [0], [1], [0, 0, 1, 1], [], []>} : vector<8x16xf32>, vector<16x32xf32>, vector<8x32xf32> -> vector<8x32xf32>
    %67 = tpu.concatenate %66, %66 in 1 : vector<8x32xf32>, vector<8x32xf32> -> vector<8x64xf32>
    %c0_38 = arith.constant 0 : index
    %c0_39 = arith.constant 0 : index
    %c576 = arith.constant 576 : index
    %68 = vector.load %arg6[%c0_38, %c0_39, %c576] : memref<1x8x1024xf32, #tpu.memory_space<vmem>>, vector<1x8x64xf32>
    %69 = vector.shape_cast %68 : vector<1x8x64xf32> to vector<8x64xf32>
    %70 = vector.shape_cast %67 : vector<8x64xf32> to vector<1x8x64xf32>
    tpu.vector_store %arg6[%c0_38, %c0_39, %c576], %70 {strides = array<i32>} : memref<1x8x1024xf32, #tpu.memory_space<vmem>>, vector<1x8x64xf32>,
    %71 = vector.extract_strided_slice %10 {offsets = [0, 160], sizes = [8, 16], strides = [1, 1]} : vector<8x256xf32> to vector<8x16xf32>
    %cst_40 = arith.constant dense<0.000000e+00> : vector<8x32xf32>
    %72 = tpu.matmul %71, %4, %cst_40 {dimension_numbers = #tpu.dot_dimension_numbers<[1], [0], [0], [1], [0, 0, 1, 1], [], []>} : vector<8x16xf32>, vector<16x32xf32>, vector<8x32xf32> -> vector<8x32xf32>
    %73 = tpu.concatenate %72, %72 in 1 : vector<8x32xf32>, vector<8x32xf32> -> vector<8x64xf32>
    %c0_41 = arith.constant 0 : index
    %c0_42 = arith.constant 0 : index
    %c640 = arith.constant 640 : index
    %74 = vector.load %arg6[%c0_41, %c0_42, %c640] : memref<1x8x1024xf32, #tpu.memory_space<vmem>>, vector<1x8x64xf32>
    %75 = vector.shape_cast %74 : vector<1x8x64xf32> to vector<8x64xf32>
    %76 = vector.shape_cast %73 : vector<8x64xf32> to vector<1x8x64xf32>
    tpu.vector_store %arg6[%c0_41, %c0_42, %c640], %76 {strides = array<i32>} : memref<1x8x1024xf32, #tpu.memory_space<vmem>>, vector<1x8x64xf32>,
    %77 = vector.extract_strided_slice %10 {offsets = [0, 176], sizes = [8, 16], strides = [1, 1]} : vector<8x256xf32> to vector<8x16xf32>
    %cst_43 = arith.constant dense<0.000000e+00> : vector<8x32xf32>
    %78 = tpu.matmul %77, %4, %cst_43 {dimension_numbers = #tpu.dot_dimension_numbers<[1], [0], [0], [1], [0, 0, 1, 1], [], []>} : vector<8x16xf32>, vector<16x32xf32>, vector<8x32xf32> -> vector<8x32xf32>
    %79 = tpu.concatenate %78, %78 in 1 : vector<8x32xf32>, vector<8x32xf32> -> vector<8x64xf32>
    %c0_44 = arith.constant 0 : index
    %c0_45 = arith.constant 0 : index
    %c704 = arith.constant 704 : index
    %80 = vector.load %arg6[%c0_44, %c0_45, %c704] : memref<1x8x1024xf32, #tpu.memory_space<vmem>>, vector<1x8x64xf32>
    %81 = vector.shape_cast %80 : vector<1x8x64xf32> to vector<8x64xf32>
    %82 = vector.shape_cast %79 : vector<8x64xf32> to vector<1x8x64xf32>
    tpu.vector_store %arg6[%c0_44, %c0_45, %c704], %82 {strides = array<i32>} : memref<1x8x1024xf32, #tpu.memory_space<vmem>>, vector<1x8x64xf32>,
    %83 = vector.extract_strided_slice %10 {offsets = [0, 192], sizes = [8, 16], strides = [1, 1]} : vector<8x256xf32> to vector<8x16xf32>
    %cst_46 = arith.constant dense<0.000000e+00> : vector<8x32xf32>
    %84 = tpu.matmul %83, %4, %cst_46 {dimension_numbers = #tpu.dot_dimension_numbers<[1], [0], [0], [1], [0, 0, 1, 1], [], []>} : vector<8x16xf32>, vector<16x32xf32>, vector<8x32xf32> -> vector<8x32xf32>
    %85 = tpu.concatenate %84, %84 in 1 : vector<8x32xf32>, vector<8x32xf32> -> vector<8x64xf32>
    %c0_47 = arith.constant 0 : index
    %c0_48 = arith.constant 0 : index
    %c768 = arith.constant 768 : index
    %86 = vector.load %arg6[%c0_47, %c0_48, %c768] : memref<1x8x1024xf32, #tpu.memory_space<vmem>>, vector<1x8x64xf32>
    %87 = vector.shape_cast %86 : vector<1x8x64xf32> to vector<8x64xf32>
    %88 = vector.shape_cast %85 : vector<8x64xf32> to vector<1x8x64xf32>
    tpu.vector_store %arg6[%c0_47, %c0_48, %c768], %88 {strides = array<i32>} : memref<1x8x1024xf32, #tpu.memory_space<vmem>>, vector<1x8x64xf32>,
    %89 = vector.extract_strided_slice %10 {offsets = [0, 208], sizes = [8, 16], strides = [1, 1]} : vector<8x256xf32> to vector<8x16xf32>
    %cst_49 = arith.constant dense<0.000000e+00> : vector<8x32xf32>
    %90 = tpu.matmul %89, %4, %cst_49 {dimension_numbers = #tpu.dot_dimension_numbers<[1], [0], [0], [1], [0, 0, 1, 1], [], []>} : vector<8x16xf32>, vector<16x32xf32>, vector<8x32xf32> -> vector<8x32xf32>
    %91 = tpu.concatenate %90, %90 in 1 : vector<8x32xf32>, vector<8x32xf32> -> vector<8x64xf32>
    %c0_50 = arith.constant 0 : index
    %c0_51 = arith.constant 0 : index
    %c832 = arith.constant 832 : index
    %92 = vector.load %arg6[%c0_50, %c0_51, %c832] : memref<1x8x1024xf32, #tpu.memory_space<vmem>>, vector<1x8x64xf32>
    %93 = vector.shape_cast %92 : vector<1x8x64xf32> to vector<8x64xf32>
    %94 = vector.shape_cast %91 : vector<8x64xf32> to vector<1x8x64xf32>
    tpu.vector_store %arg6[%c0_50, %c0_51, %c832], %94 {strides = array<i32>} : memref<1x8x1024xf32, #tpu.memory_space<vmem>>, vector<1x8x64xf32>,
    %95 = vector.extract_strided_slice %10 {offsets = [0, 224], sizes = [8, 16], strides = [1, 1]} : vector<8x256xf32> to vector<8x16xf32>
    %cst_52 = arith.constant dense<0.000000e+00> : vector<8x32xf32>
    %96 = tpu.matmul %95, %4, %cst_52 {dimension_numbers = #tpu.dot_dimension_numbers<[1], [0], [0], [1], [0, 0, 1, 1], [], []>} : vector<8x16xf32>, vector<16x32xf32>, vector<8x32xf32> -> vector<8x32xf32>
    %97 = tpu.concatenate %96, %96 in 1 : vector<8x32xf32>, vector<8x32xf32> -> vector<8x64xf32>
    %c0_53 = arith.constant 0 : index
    %c0_54 = arith.constant 0 : index
    %c896 = arith.constant 896 : index
    %98 = vector.load %arg6[%c0_53, %c0_54, %c896] : memref<1x8x1024xf32, #tpu.memory_space<vmem>>, vector<1x8x64xf32>
    %99 = vector.shape_cast %98 : vector<1x8x64xf32> to vector<8x64xf32>
    %100 = vector.shape_cast %97 : vector<8x64xf32> to vector<1x8x64xf32>
    tpu.vector_store %arg6[%c0_53, %c0_54, %c896], %100 {strides = array<i32>} : memref<1x8x1024xf32, #tpu.memory_space<vmem>>, vector<1x8x64xf32>,
    %101 = vector.extract_strided_slice %10 {offsets = [0, 240], sizes = [8, 16], strides = [1, 1]} : vector<8x256xf32> to vector<8x16xf32>
    %cst_55 = arith.constant dense<0.000000e+00> : vector<8x32xf32>
    %102 = tpu.matmul %101, %4, %cst_55 {dimension_numbers = #tpu.dot_dimension_numbers<[1], [0], [0], [1], [0, 0, 1, 1], [], []>} : vector<8x16xf32>, vector<16x32xf32>, vector<8x32xf32> -> vector<8x32xf32>
    %103 = tpu.concatenate %102, %102 in 1 : vector<8x32xf32>, vector<8x32xf32> -> vector<8x64xf32>
    %c0_56 = arith.constant 0 : index
    %c0_57 = arith.constant 0 : index
    %c960 = arith.constant 960 : index
    %104 = vector.load %arg6[%c0_56, %c0_57, %c960] : memref<1x8x1024xf32, #tpu.memory_space<vmem>>, vector<1x8x64xf32>
    %105 = vector.shape_cast %104 : vector<1x8x64xf32> to vector<8x64xf32>
    %106 = vector.shape_cast %103 : vector<8x64xf32> to vector<1x8x64xf32>
    tpu.vector_store %arg6[%c0_56, %c0_57, %c960], %106 {strides = array<i32>} : memref<1x8x1024xf32, #tpu.memory_space<vmem>>, vector<1x8x64xf32>,
    return
  }
  func.func @transform_0(%arg0: i32, %arg1: i32) -> (i32, i32, i32) {
    %c0_i32 = arith.constant 0 : i32
    %c0_i32_0 = arith.constant 0 : i32
    return %arg0, %c0_i32, %arg1 : i32, i32, i32
  }
  func.func @transform_1(%arg0: i32, %arg1: i32) -> (i32, i32) {
    %c0_i32 = arith.constant 0 : i32
    %c0_i32_0 = arith.constant 0 : i32
    %c0_i32_1 = arith.constant 0 : i32
    return %c0_i32, %c0_i32_0 : i32, i32
  }
  func.func @transform_2(%arg0: i32, %arg1: i32) -> (i32, i32) {
    %c0_i32 = arith.constant 0 : i32
    %c0_i32_0 = arith.constant 0 : i32
    %c0_i32_1 = arith.constant 0 : i32
    return %c0_i32, %c0_i32_0 : i32, i32
  }
  func.func @transform_3(%arg0: i32, %arg1: i32) -> (i32, i32) {
    %c0_i32 = arith.constant 0 : i32
    %c0_i32_0 = arith.constant 0 : i32
    %c0_i32_1 = arith.constant 0 : i32
    return %c0_i32, %c0_i32_0 : i32, i32
  }
  func.func @transform_4(%arg0: i32, %arg1: i32) -> (i32, i32, i32) {
    %c0_i32 = arith.constant 0 : i32
    %c0_i32_0 = arith.constant 0 : i32
    return %arg0, %c0_i32, %arg1 : i32, i32, i32
  }
}

</mosaic_0001>

<bundles_post_ra>
// kernel: tpu_custom_call.1
= control target key start
LH: loop header
LB: loop body
LE: loop exit
PB: predicated region body
PF: predicated region fallthrough
CT: control target
= control target key end

     0   :  { %9 = vsyncpa [#allocation3], 0  ;;  %s2473_s0 = inlined_call_operand.vmem [shape: f32[2,4,256], index: 0, kind: input, shape index: {}]   ;;  %s2474_s1 = inlined_call_operand.vmem [shape: f32[8,4], index: 1, kind: input, shape index: {}]   ;;  %s2475_s2 = inlined_call_operand.vmem [shape: f32[8,1], index: 2, kind: input, shape index: {}]   ;;  %s2476_s3 = inlined_call_operand.vmem [shape: f32[16,32], index: 3, kind: input, shape index: {}]   ;;  %s2477_s4 = inlined_call_operand.hbm [shape: f32[2,8,1024], index: 4, kind: output, shape index: {}]  }
   0x1   :  { %11 = vsyncpa [#allocation3 + $0x1], 0  ;;  %s2157_s15 = smov 0   ;;  %s2159_s16 = smov 0  }
   0x2   :  { %s2161_s17 = smov 0   ;;  %s2163_s18 = smov 0  }
   0x3   :  { %s2165_s19 = smov 0   ;;  %s2167_s20 = smov 0  }
   0x4 LB: > { %s1730_s21 = sadd.s32 4294967295, %s2118_s20   ;;  %s1731_s22 = sadd.s32 4294967294, %s2118_s20   ;;  %s2118_s20 = sphi %s2167_s20, %s17_s20   ;;  %s2114_s19 = sphi %s2165_s19, %s2484_s19   ;;  %s2110_s18 = sphi %s2163_s18, %s2483_s18   ;;  %s2106_s17 = sphi %s2161_s17, %s2482_s17   ;;  %s2102_s16 = sphi %s2159_s16, %s2481_s16   ;;  %s2098_s15 = sphi %s2157_s15, %s2480_s15  }
   0x5   : > { %s29_s23 = sadd.s32 1, %s2114_s19  ;;  %s129_s24 = sadd.s32 1, %s2106_s17 }
   0x6   : > { %p31_p0 = scmp.ge.s32.totalorder %s29_s23, 2  ;;  %p139_p1 = scmp.ne.s32.totalorder %s2106_s17, %s2102_s16 }
   0x7   : > { %p140_p2 = scmp.eq.s32.totalorder %s1730_s21, 1  ;;  %p145_p3 = scmp.ne.s32.totalorder %s2102_s16, %s2098_s15 }
   0x8   : > { %s2486_s23 = smov (%p31_p0, %s29_s23), 0  ;;  %p146_p5 = scmp.eq.s32.totalorder %s1731_s22, 1 }
   0x9   : > { %p2197_p4 = por %p140_p2, %p139_p1  ;;  %s124_s26 = ssub.s32 %s2114_s19, %s2486_s23 }
   0xa   : > { %p1734_p6 = scmp.ge.s32.totalorder %s2118_s20, 1  ;;  %p127_p7 = scmp.eq.s32.totalorder %s124_s26, 0 }
   0xb   : > { %p2204_p8 = por %p146_p5, %p145_p3  ;;  %p186_p9 = scmp.lt.s32.totalorder %s2118_s20, 3 }
   0xc   : > { %s2210_s28 = scalar_select %p127_p7, %s2106_s17, %s129_s24  }
   0xd   : > { %p187_p10 = pnand %p1734_p6, %p186_p9 }
   0xe   : > { %p217_p11 = scmp.lt.s32.totalorder (!%p187_p10), %s2110_s18, 1  ;;  %v2120_v0 = vmov (!%p187_p10), 0.0   ;;  %v2121_v1 = vmov (!%p187_p10), 0   ;;  %v229_v2 = vld [vmem:[%s2475_s2] sm:$0xff] (!%p187_p10)  ;;  %vm243_vm0 = vcmask (!%p187_p10), 1043456   ;;  %vm239_vm1 = vcmask (!%p187_p10), 31744  }
   0xf   : > { %190 = sbr.rel (%p187_p10) target bundleno = 849 (0x351), region = 36  ;;  %312 = vmatprep.mubr.f32.mxu0 (!%p187_p10), %v2120_v0  ;;  %2038 = vset.pattern.permute.xlu0 (!%p187_p10), %v2121_v1  ;;  %v228_v5 = vld [vmem:[%s2474_s1] sm:$0xff] (!%p187_p10)  ;;  %v231_v7 = vld [vmem:[%s2476_s3 + $0x8] sm:$0xff] (!%p187_p10)  ;;  %v2122_v9 = vmov (!%p187_p10), 0.0|0.0   ;;  %vm2123_vm2 = vmmov (!%p187_p10), 0   ;;  %vm323_vm3 = vcmask (!%p187_p10), 130048  }
  0x10   : > { %234 = vperm.xlu0 (!%p187_p10), %2038, %v229_v2   ;;  %v230_v6 = vld [vmem:[%s2476_s3] sm:$0xff] (!%p187_p10)  ;;  %1924 = vmatprep.subr.bf16.mxu1 (!%p187_p10), %v2122_v9  ;;  %s2124_s22 = smov (!%p187_p10), 80   ;;  %s2125_s24 = smov (!%p187_p10), 112   ;;  %vm401_vm4 = vcmask (!%p187_p10), 261120   ;;  %vm403_vm5 = vcmask (!%p187_p10), 523264   ;;  %vm488_vm6 = vcmask (!%p187_p10), 1048064  }
  0x11   : > { %v2230_v8 = vpack.c.bf16 (!%p187_p10), %v231_v7, %v230_v6  ;;  %1816 = vmatprep.mubr.msk.f32.mxu1 (!%p187_p10), %vm2123_vm2, %v2120_v0  ;;  %s2126_s26 = smov (!%p187_p10), 48   ;;  %s2127_s29 = smov (!%p187_p10), 16  }
  0x12   : > { %s2128_s30 = smov (!%p187_p10), 96   ;;  %s213_s7 = sand.u32 (!%p187_p10), 1, %s2102_s16  }
  0x13   : > { %1926 = vmatpush3.bf16.msra.mxu1 (!%p187_p10), %v2230_v8  ;;  %s1735_s8 = sshll.u32 (!%p187_p10), %s213_s7, 6  ;;  %s1763_s10 = sshll.u32 (!%p187_p10), %s2110_s18, 10 }
  0x14   : > { %1930 = vmatprep.subr.bf16.mxu1 (!%p187_p10), %v2122_v9  ;;  %s2422_s14 = scalar_lea.hbm (!%p187_p10), %s2477_s4, %s1763_s10  ;;  %s1638_s21 = scalar_lea.sflag (!%p187_p10), [#allocation3], %s213_s7 }
  0x16   : > { %s218_s5 = scalar_select %p217_p11, %s2110_s18, 1 }
  0x17   : > { %s2131_s18 = smov [#allocation2]  }
  0x18   : > { %s1762_s6 = sshll.u32 %s218_s5, 3  ;;  %s2129_s5 = smov 64  }
  0x19   : > { %s224_s9 = scalar_lea.vmem %s2473_s0, %s1762_s6  ;;  %s2130_s6 = smov 32  }
  0x1a   : > { %v227_v3 = vld [vmem:[%s224_s9] sm:$0xff]  ;;  %s2374_s9 = scalar_lea.vmem [#allocation2], %s1735_s8 }
  0x1b   : > { %v238_v4 = vcombine.high %v227_v3, %v227_v3  ;;  %s1654_s11 = sshll.u32 %s2374_s9, 4  ;;  %s2424_s11 = int_to_ptr.vmem [resolvable:$true] %s1654_s11 }
  0x1d   : > { %1738 = vmatprep.subr.msk.mxu0 %vm243_vm0, %v238_v4 }
  0x1e   : > { %1739 = vmatpush1.msk.msra.mxu0 %vm243_vm0, %v227_v3 }
  0x1f   : > { %1740 = vmatmul.mubr.msk.f32.vlgmr.msra.gmra.mrb[0].mxu0 %vm239_vm1, %v228_v5  ;;  %1927 = vmatprep.subr.bf16.mxu0 %v2122_v9 }
  0x20   : > { %1929 = vmatpush3.bf16.msra.mxu0 %v2230_v8  ;;  %1823 = vmatprep.mubr.msk.f32.mxu0 %vm2123_vm2, %v2120_v0 }
  0x21   : > { %1933 = vmatprep.subr.bf16.mxu0 %v2122_v9 }
  0x8f   : > { %v235_v10 = vpop.permute.xlu0 %234 }
  0xf2   : > { %v314_v11 = vpop.f32.mrb[0].mxu0 }
  0xf3   : > { %v315_v12 = vadd.f32 %v314_v11, %v235_v10  ;;  %v316_v13 = vpop.f32.mrb[1].mxu0 }
  0xf4   : > { %v317_v16 = vadd.f32 %v316_v13, %v235_v10 }
  0xf5   : > { %v319_v14 = vmul.f32 0.1, %v315_v12 }
  0xf6   : > { %v320_v17 = vmul.f32 0.1, %v317_v16 }
  0xf7   : > { %v321_v15 = vmax.f32 %v315_v12, %v319_v14 }
  0xf8   : > { %v2247_v18 = vmax.f32 %v317_v16, %v320_v17 }
  0xf9   : > { %570 = vrot.lane.b32.xlu1 %v321_v15, %s2124_s22  ;;  %405 = vrot.lane.b32.xlu0 %v321_v15, %s2125_s24 }
  0xfa   : > { %1817 = vmatmul.mubr.msk.f32.vlgmr.msra.gmra.mrb[0].mxu1 %vm323_vm3, %v321_v15 }
  0xfb   : > { %1932 = vmatpush3.bf16.msra.mxu1 %v2230_v8  ;;  %1830 = vmatprep.mubr.msk.f32.mxu1 %vm2123_vm2, %v2120_v0 }
  0xfc   : > { %1936 = vmatprep.subr.bf16.mxu1 %v2122_v9 }
  0xfd   : > { %734 = vrot.lane.b32.xlu1 %v321_v15, %s2126_s26  ;;  %898 = vrot.lane.b32.xlu0 %v321_v15, %s2127_s29 }
 0x101   : > { %1061 = vrot.lane.b32.xlu1 %v2247_v18, %s2125_s24  ;;  %1225 = vrot.lane.b32.xlu0 %v2247_v18, %s2124_s22  ;;  %s2040_s22 = scalar_lea.vmem %s2424_s11, 1024  ;;  %s2044_s24 = sshll.u32 %s2131_s18, 4  ;;  %s2045_s24 = int_to_ptr.vmem [resolvable:$false] %s2044_s24 }
 0x102   : > { %p2041_p12 = scmp.ne.s32.totalorder %s2424_s11, %s2040_s22  ;;  %p2047_p1 = scmp.lt.s32.totalorder %s2424_s11, %s2045_s24 }
 0x104   : > { %p2042_p13 = pnand %p2041_p12, %p2197_p4 }
 0x105   : > { %1389 = vrot.lane.b32.xlu1 %v2247_v18, %s2126_s26  ;;  %1553 = vrot.lane.b32.xlu0 %v2247_v18, %s2127_s29  ;;  %s2046_s26 = scalar_lea.vmem %s2045_s24, 2048 }
 0x106   : > { %p2043_p0 = pneg %p2042_p13  ;;  %p2048_p2 = scmp.lt.s32.totalorder %s2046_s26, %s2040_s22 }
 0x108   : > { %p2049_p3 = por %p2048_p2, %p2047_p1 }
 0x109   : > { %490 = vrot.lane.b32.xlu1 %v321_v15, %s2128_s30  ;;  %654 = vrot.lane.b32.xlu0 %v321_v15, %s2129_s5 }
 0x10a   : > { %p2050_p5 = pnand %p2049_p3, %p2043_p0 }
 0x10d   : > { %818 = vrot.lane.b32.xlu1 %v321_v15, %s2130_s6  ;;  %1145 = vrot.lane.b32.xlu0 %v2247_v18, %s2128_s30 }
 0x111   : > { %1309 = vrot.lane.b32.xlu1 %v2247_v18, %s2129_s5  ;;  %1473 = vrot.lane.b32.xlu0 %v2247_v18, %s2130_s6 }
 0x16b   : > { %v571_v19 = vpop.permute.xlu1 %570  ;;  %v406_v20 = vpop.permute.xlu0 %405 }
 0x16c   : > { %1824 = vmatmul.mubr.msk.f32.vlgmr.msra.gmra.mrb[2].mxu0 %vm323_vm3, %v406_v20 }
 0x16d   : > { %1935 = vmatpush3.bf16.msra.mxu0 %v2230_v8  ;;  %1837 = vmatprep.mubr.msk.f32.mxu0 %vm2123_vm2, %v2120_v0 }
 0x16e   : > { %1939 = vmatprep.subr.bf16.mxu0 %v2122_v9 }
 0x16f   : > { %v735_v21 = vpop.permute.xlu1 %734  ;;  %v899_v22 = vpop.permute.xlu0 %898 }
 0x170   : > { %1838 = vmatmul.mubr.msk.f32.vlgmr.msra.gmra.mrb[4].mxu0 %vm323_vm3, %v571_v19 }
 0x171   : > { %1941 = vmatpush3.bf16.msra.mxu0 %v2230_v8  ;;  %1851 = vmatprep.mubr.msk.f32.mxu0 %vm2123_vm2, %v2120_v0 }
 0x172   : > { %1945 = vmatprep.subr.bf16.mxu0 %v2122_v9 }
 0x173   : > { %v1062_v23 = vpop.permute.xlu1 %1061  ;;  %v1226_v24 = vpop.permute.xlu0 %1225 }
 0x174   : > { %1852 = vmatmul.mubr.msk.f32.vlgmr.msra.gmra.mrb[6].mxu0 %vm323_vm3, %v735_v21 }
 0x175   : > { %1947 = vmatpush3.bf16.msra.mxu0 %v2230_v8  ;;  %1865 = vmatprep.mubr.msk.f32.mxu0 %vm2123_vm2, %v2120_v0 }
 0x176   : > { %1951 = vmatprep.subr.bf16.mxu0 %v2122_v9 }
 0x177   : > { %v1390_v25 = vpop.permute.xlu1 %1389  ;;  %v1554_v26 = vpop.permute.xlu0 %1553 }
 0x178   : > { %1866 = vmatmul.mubr.msk.f32.vlgmr.msra.gmra.mrb[8].mxu0 %vm323_vm3, %v899_v22 }
 0x179   : > { %1953 = vmatpush3.bf16.msra.mxu0 %v2230_v8  ;;  %1879 = vmatprep.mubr.msk.f32.mxu0 %vm2123_vm2, %v2120_v0 }
 0x17a   : > { %1957 = vmatprep.subr.bf16.mxu0 %v2122_v9 }
 0x17b   : > { %v491_v27 = vpop.permute.xlu1 %490  ;;  %v655_v28 = vpop.permute.xlu0 %654 }
 0x17c   : > { %1831 = vmatmul.mubr.msk.f32.vlgmr.msra.gmra.mrb[2].mxu1 %vm323_vm3, %v491_v27  ;;  %1880 = vmatmul.mubr.msk.f32.vlgmr.msra.gmra.mrb[10].mxu0 %vm323_vm3, %v1062_v23 }
 0x17d   : > { %1959 = vmatpush3.bf16.msra.mxu0 %v2230_v8  ;;  %1938 = vmatpush3.bf16.msra.mxu1 %v2230_v8 }
 0x17e   : > { %1893 = vmatprep.mubr.msk.f32.mxu0 %vm2123_vm2, %v2120_v0  ;;  %1963 = vmatprep.subr.bf16.mxu0 %v2122_v9 }
 0x17f   : > { %1844 = vmatprep.mubr.msk.f32.mxu1 %vm2123_vm2, %v2120_v0  ;;  %1942 = vmatprep.subr.bf16.mxu1 %v2122_v9  ;;  %v819_v29 = vpop.permute.xlu1 %818  ;;  %v1146_v30 = vpop.permute.xlu0 %1145 }
 0x180   : > { %1845 = vmatmul.mubr.msk.f32.vlgmr.msra.gmra.mrb[4].mxu1 %vm323_vm3, %v655_v28  ;;  %1894 = vmatmul.mubr.msk.f32.vlgmr.msra.gmra.mrb[12].mxu0 %vm323_vm3, %v1226_v24 }
 0x181   : > { %1965 = vmatpush3.bf16.msra.mxu0 %v2230_v8  ;;  %1944 = vmatpush3.bf16.msra.mxu1 %v2230_v8 }
 0x182   : > { %1907 = vmatprep.mubr.msk.f32.mxu0 %vm2123_vm2, %v2120_v0  ;;  %1969 = vmatprep.subr.bf16.mxu0 %v2122_v9 }
 0x183   : > { %1858 = vmatprep.mubr.msk.f32.mxu1 %vm2123_vm2, %v2120_v0  ;;  %1948 = vmatprep.subr.bf16.mxu1 %v2122_v9  ;;  %v1310_v31 = vpop.permute.xlu1 %1309  ;;  %v1474_v32 = vpop.permute.xlu0 %1473 }
 0x184   : > { %1859 = vmatmul.mubr.msk.f32.vlgmr.msra.gmra.mrb[6].mxu1 %vm323_vm3, %v819_v29  ;;  %1908 = vmatmul.mubr.msk.f32.vlgmr.msra.gmra.mrb[14].mxu0 %vm323_vm3, %v1390_v25 }
 0x185   : > { %1971 = vmatpush3.bf16.msra.mxu0 %v2230_v8  ;;  %1950 = vmatpush3.bf16.msra.mxu1 %v2230_v8 }
 0x186   : > { %1872 = vmatprep.mubr.msk.f32.mxu1 %vm2123_vm2, %v2120_v0  ;;  %1921 = vmatprep.mubr.msk.f32.mxu0 %vm2123_vm2, %v2120_v0 }
 0x187   : > { %1954 = vmatprep.subr.bf16.mxu1 %v2122_v9 }
 0x188   : > { %1873 = vmatmul.mubr.msk.f32.vlgmr.msra.gmra.mrb[8].mxu1 %vm323_vm3, %v2247_v18  ;;  %1922 = vmatmul.mubr.msk.f32.vlgmr.msra.gmra.mrb[16].mxu0 %vm323_vm3, %v1554_v26 }
 0x189   : > { %1956 = vmatpush3.bf16.msra.mxu1 %v2230_v8  ;;  %1886 = vmatprep.mubr.msk.f32.mxu1 %vm2123_vm2, %v2120_v0 }
 0x18a   : > { %1960 = vmatprep.subr.bf16.mxu1 %v2122_v9 }
 0x18c   : > { %1887 = vmatmul.mubr.msk.f32.vlgmr.msra.gmra.mrb[10].mxu1 %vm323_vm3, %v1146_v30 }
 0x18d   : > { %1962 = vmatpush3.bf16.msra.mxu1 %v2230_v8  ;;  %1900 = vmatprep.mubr.msk.f32.mxu1 %vm2123_vm2, %v2120_v0 }
 0x18e   : > { %1966 = vmatprep.subr.bf16.mxu1 %v2122_v9 }
 0x190   : > { %1901 = vmatmul.mubr.msk.f32.vlgmr.msra.gmra.mrb[12].mxu1 %vm323_vm3, %v1310_v31 }
 0x191   : > { %1968 = vmatpush3.bf16.msra.mxu1 %v2230_v8  ;;  %1914 = vmatprep.mubr.msk.f32.mxu1 %vm2123_vm2, %v2120_v0 }
 0x194   : > { %1915 = vmatmul.mubr.msk.f32.vlgmr.msra.gmra.mrb[14].mxu1 %vm323_vm3, %v1474_v32 }
 0x1cd   : > { %v2326_v33 = vpop.f32.mrb[0].mxu1 }
 0x1ce   : > { %v1818_v34 = vpop.f32.mrb[1].mxu1 }
 0x23f   : > { %v475_v35 = vpop.f32.mrb[2].mxu0 }
 0x240   : > { %480 = vrot.lane.b32.xlu1 %v475_v35, %s2130_s6  ;;  %v1825_v36 = vpop.f32.mrb[3].mxu0 }
 0x243   : > { %v640_v37 = vpop.f32.mrb[4].mxu0 }
 0x244   : > { %645 = vrot.lane.b32.xlu0 %v640_v37, %s2130_s6  ;;  %v1839_v38 = vpop.f32.mrb[5].mxu0 }
 0x247   : > { %v804_v39 = vpop.f32.mrb[6].mxu0 }
 0x248   : > { %809 = vrot.lane.b32.xlu1 %v804_v39, %s2130_s6  ;;  %v1853_v40 = vpop.f32.mrb[7].mxu0 }
 0x24b   : > { %v968_v41 = vpop.f32.mrb[8].mxu0 }
 0x24c   : > { %973 = vrot.lane.b32.xlu0 %v968_v41, %s2130_s6  ;;  %v1867_v42 = vpop.f32.mrb[9].mxu0 }
 0x24f   : > { %v2332_v43 = vpop.f32.mrb[2].mxu1  ;;  %v1131_v44 = vpop.f32.mrb[10].mxu0 }
 0x250   : > { %1136 = vrot.lane.b32.xlu1 %v1131_v44, %s2130_s6  ;;  %v1832_v45 = vpop.f32.mrb[3].mxu1  ;;  %v1881_v46 = vpop.f32.mrb[11].mxu0 }
 0x253   : > { %v2335_v47 = vpop.f32.mrb[4].mxu1  ;;  %v1295_v48 = vpop.f32.mrb[12].mxu0 }
 0x254   : > { %1300 = vrot.lane.b32.xlu0 %v1295_v48, %s2130_s6  ;;  %v1846_v49 = vpop.f32.mrb[5].mxu1  ;;  %v1895_v50 = vpop.f32.mrb[13].mxu0 }
 0x257   : > { %v2338_v51 = vpop.f32.mrb[6].mxu1  ;;  %v1459_v52 = vpop.f32.mrb[14].mxu0 }
 0x258   : > { %1464 = vrot.lane.b32.xlu1 %v1459_v52, %s2130_s6  ;;  %v1860_v53 = vpop.f32.mrb[7].mxu1  ;;  %v1909_v54 = vpop.f32.mrb[15].mxu0 }
 0x25b   : > { %v1051_v55 = vpop.f32.mrb[8].mxu1  ;;  %v1623_v56 = vpop.f32.mrb[16].mxu0 }
 0x25c   : > { %1628 = vrot.lane.b32.xlu0 %v1623_v56, %s2130_s6  ;;  %v1923_v57 = vpop.f32.mrb[17].mxu0  ;;  %398 = vrot.lane.b32.xlu1 %v2326_v33, %s2130_s6  ;;  %v1874_v58 = vpop.f32.mrb[9].mxu1 }
 0x25f   : > { %v1215_v59 = vpop.f32.mrb[10].mxu1 }
 0x260   : > { %565 = vrot.lane.b32.xlu0 %v2332_v43, %s2130_s6  ;;  %729 = vrot.lane.b32.xlu1 %v2335_v47, %s2130_s6  ;;  %v1888_v60 = vpop.f32.mrb[11].mxu1 }
 0x263   : > { %v1379_v61 = vpop.f32.mrb[12].mxu1 }
 0x264   : > { %893 = vrot.lane.b32.xlu0 %v2338_v51, %s2130_s6  ;;  %1056 = vrot.lane.b32.xlu1 %v1051_v55, %s2130_s6  ;;  %v1902_v62 = vpop.f32.mrb[13].mxu1 }
 0x267   : > { %v1543_v63 = vpop.f32.mrb[14].mxu1 }
 0x268   : > { %1220 = vrot.lane.b32.xlu0 %v1215_v59, %s2130_s6  ;;  %1384 = vrot.lane.b32.xlu1 %v1379_v61, %s2130_s6  ;;  %v1916_v0 = vpop.f32.mrb[15].mxu1 }
 0x26c   : > { %1548 = vrot.lane.b32.xlu0 %v1543_v63, %s2130_s6 }
 0x2b2   : > { %v481_v1 = vpop.permute.xlu1 %480 }
 0x2b3   : > { %v483_v2 = vsel %vm401_vm4, %v475_v35, %v481_v1 }
 0x2b4   : > { %485 = vrot.lane.b32.xlu1 %v483_v2, %s2129_s5 }
 0x2b6   : > { %v646_v3 = vpop.permute.xlu0 %645 }
 0x2b7   : > { %v648_v4 = vsel %vm401_vm4, %v640_v37, %v646_v3 }
 0x2b8   : > { %650 = vrot.lane.b32.xlu0 %v648_v4, %s2129_s5 }
 0x2ba   : > { %v810_v5 = vpop.permute.xlu1 %809 }
 0x2bb   : > { %v812_v6 = vsel %vm401_vm4, %v804_v39, %v810_v5 }
 0x2bc   : > { %814 = vrot.lane.b32.xlu1 %v812_v6, %s2129_s5 }
 0x2be   : > { %v974_v7 = vpop.permute.xlu0 %973 }
 0x2bf   : > { %v976_v8 = vsel %vm401_vm4, %v968_v41, %v974_v7 }
 0x2c0   : > { %978 = vrot.lane.b32.xlu0 %v976_v8, %s2129_s5 }
 0x2c2   : > { %v1137_v9 = vpop.permute.xlu1 %1136 }
 0x2c3   : > { %v1139_v10 = vsel %vm401_vm4, %v1131_v44, %v1137_v9 }
 0x2c4   : > { %1141 = vrot.lane.b32.xlu1 %v1139_v10, %s2129_s5 }
 0x2c6   : > { %v1301_v11 = vpop.permute.xlu0 %1300 }
 0x2c7   : > { %v1303_v12 = vsel %vm401_vm4, %v1295_v48, %v1301_v11 }
 0x2c8   : > { %1305 = vrot.lane.b32.xlu0 %v1303_v12, %s2129_s5 }
 0x2ca   : > { %v1465_v13 = vpop.permute.xlu1 %1464 }
 0x2cb   : > { %v1467_v14 = vsel %vm401_vm4, %v1459_v52, %v1465_v13 }
 0x2cc   : > { %1469 = vrot.lane.b32.xlu1 %v1467_v14, %s2129_s5 }
 0x2ce   : > { %v1629_v15 = vpop.permute.xlu0 %1628  ;;  %v399_v16 = vpop.permute.xlu1 %398 }
 0x2cf   : > { %v402_v17 = vsel %vm401_vm4, %v2326_v33, %v399_v16  ;;  %v1631_v18 = vsel %vm401_vm4, %v1623_v56, %v1629_v15 }
 0x2d0   : > { %404 = vst.msk [vmem:[%s2374_s9] sm:$0xff] %vm403_vm5, %v402_v17  ;;  %1633 = vrot.lane.b32.xlu0 %v1631_v18, %s2129_s5 }
 0x2d2   : > { %v566_v19 = vpop.permute.xlu0 %565  ;;  %v730_v20 = vpop.permute.xlu1 %729 }
 0x2d3   : > { %v568_v21 = vsel %vm401_vm4, %v2332_v43, %v566_v19  ;;  %v732_v22 = vsel %vm401_vm4, %v2335_v47, %v730_v20 }
 0x2d4   : > { %569 = vst.msk [vmem:[%s2374_s9 + $0x8] sm:$0xff] %vm403_vm5, %v568_v21  ;;  %733 = vst.msk [vmem:[%s2374_s9 + $0x10] sm:$0xff] %vm403_vm5, %v732_v22 }
 0x2d6   : > { %v894_v23 = vpop.permute.xlu0 %893  ;;  %v1057_v24 = vpop.permute.xlu1 %1056 }
 0x2d7   : > { %v896_v25 = vsel %vm401_vm4, %v2338_v51, %v894_v23  ;;  %v1059_v26 = vsel %vm401_vm4, %v1051_v55, %v1057_v24 }
 0x2d8   : > { %897 = vst.msk [vmem:[%s2374_s9 + $0x18] sm:$0xff] %vm403_vm5, %v896_v25  ;;  %1060 = vst.msk [vmem:[%s2374_s9 + $0x20] sm:$0xff] %vm403_vm5, %v1059_v26 }
 0x2da   : > { %v1221_v27 = vpop.permute.xlu0 %1220  ;;  %v1385_v28 = vpop.permute.xlu1 %1384 }
 0x2db   : > { %v1223_v29 = vsel %vm401_vm4, %v1215_v59, %v1221_v27  ;;  %v1387_v30 = vsel %vm401_vm4, %v1379_v61, %v1385_v28 }
 0x2dc   : > { %1224 = vst.msk [vmem:[%s2374_s9 + $0x28] sm:$0xff] %vm403_vm5, %v1223_v29  ;;  %1388 = vst.msk [vmem:[%s2374_s9 + $0x30] sm:$0xff] %vm403_vm5, %v1387_v30 }
 0x2de   : > { %v1549_v31 = vpop.permute.xlu0 %1548 }
 0x2df   : > { %v1551_v32 = vsel %vm401_vm4, %v1543_v63, %v1549_v31 }
 0x2e0   : > { %1552 = vst.msk [vmem:[%s2374_s9 + $0x38] sm:$0xff] %vm403_vm5, %v1551_v32 }
 0x326   : > { %v486_v33 = vpop.permute.xlu1 %485 }
 0x327   : > { %489 = vst.msk [vmem:[%s2374_s9] sm:$0xff] %vm488_vm6, %v486_v33 }
 0x32a   : > { %v651_v34 = vpop.permute.xlu0 %650 }
 0x32b   : > { %653 = vst.msk [vmem:[%s2374_s9 + $0x8] sm:$0xff] %vm488_vm6, %v651_v34 }
 0x32e   : > { %v815_v35 = vpop.permute.xlu1 %814 }
 0x32f   : > { %817 = vst.msk [vmem:[%s2374_s9 + $0x10] sm:$0xff] %vm488_vm6, %v815_v35 }
 0x332   : > { %v979_v36 = vpop.permute.xlu0 %978 }
 0x333   : > { %981 = vst.msk [vmem:[%s2374_s9 + $0x18] sm:$0xff] %vm488_vm6, %v979_v36 }
 0x336   : > { %v1142_v37 = vpop.permute.xlu1 %1141 }
 0x337   : > { %1144 = vst.msk [vmem:[%s2374_s9 + $0x20] sm:$0xff] %vm488_vm6, %v1142_v37 }
 0x33a   : > { %v1306_v38 = vpop.permute.xlu0 %1305 }
 0x33b   : > { %1308 = vst.msk [vmem:[%s2374_s9 + $0x28] sm:$0xff] %vm488_vm6, %v1306_v38 }
 0x33e   : > { %v1470_v39 = vpop.permute.xlu1 %1469 }
 0x33f   : > { %1472 = vst.msk [vmem:[%s2374_s9 + $0x30] sm:$0xff] %vm488_vm6, %v1470_v39 }
 0x342   : > { %v1634_v40 = vpop.permute.xlu0 %1633 }
 0x343   : > { %1636 = vst.msk [vmem:[%s2374_s9 + $0x38] sm:$0xff] %vm488_vm6, %v1634_v40 }
 0x344   : > { %2053 = shalt.err (!%p2050_p5)
}
 0x345   : > { %s2054_s29 = scalar_lea.hbm %s2422_s14, 1024  ;;  %s2058_s6 = scalar_lea.hbm %s2477_s4, 2048 }
 0x346   : > { %p2055_p6 = scmp.ne.s32.totalorder %s2422_s14, %s2054_s29  ;;  %p2059_p10 = scmp.lt.u32.totalorder %s2422_s14, %s2477_s4 }
 0x347   : > { %p2060_p11 = scmp.lt.u32.totalorder %s2058_s6, %s2054_s29  ;;  %p2062_p13 = scmp.lt.u32.totalorder %s2054_s29, %s2422_s14 }
 0x348   : > { %p2056_p7 = pnand %p2055_p6, %p2197_p4 }
 0x349   : > { %p2061_p12 = por %p2060_p11, %p2059_p10 }
 0x34a   : > { %p2057_p9 = pneg %p2056_p7 }
 0x34b   : > { %p2063_p0 = por %p2062_p13, %p2061_p12 }
 0x34d   : > { %p2064_p1 = pnand %p2063_p0, %p2057_p9 }
 0x34f   : > { %2067 = shalt.err (!%p2064_p1)
}
 0x350   : > { %1972 = dma.vmem_to_hbm [thread:$0]  (%p2197_p4), %s2424_s11, 1024, %s2422_s14, %s1638_s21  }
 0x351 PF: > { %p1978_p2 = scmp.ge.s32.totalorder %s2118_s20, 2  ;;  %s1666_s9 = sand.u32 1, %s2098_s15  }
 0x352   : > { %s1667_s10 = scalar_lea.sflag [#allocation3], %s1666_s9 }
 0x353   : > { %p1975_p3 = pnand %p1978_p2, %p2204_p8 }
 0x355   : > { %2093 = dma.done.wait (!%p1975_p3), %s1667_s10, 1024  }
 0x356   : > { %2095 = vsyncadd (!%p1975_p3), %s1667_s10, 4294966272  ;;  %s17_s20 = sadd.s32 1, %s2118_s20   ;;  %s2480_s15 = smov %s2102_s16 }
 0x357   : > { %p14_p5 = scmp.ge.s32.totalorder %s17_s20, 4   ;;  %s2481_s16 = smov %s2106_s17 }
 0x358   : > { %s2482_s17 = smov %s2210_s28  ;;  %s2483_s18 = smov %s2114_s19 }
 0x359   : > { %s2484_s19 = smov %s2486_s23  ;;  %16 = sbr.rel (!%p14_p5) target bundleno = 4 (0x4), region = 71 }
 0x360   :  { %1672 = vsyncpa [#allocation3], 1 }
 0x361   :  { %1674 = vsyncpa [#allocation3 + $0x1], 1 }

</bundles_post_ra>
